<compile_context>
chip_gen: v7x
topology: tpu7x:2x2x1
jax: 0.10.0
libtpu: 0.0.40
codegen_flags: <defaults>
</compile_context>

<pallas_src>
import jax
import jax.numpy as jnp
from jax.experimental import pallas as pl
from jax.experimental.pallas import tpu as pltpu


def _round_up(x, m):
    return ((x + m - 1) // m) * m


def textcnn_kernel(x_ref, w_all_ref, b_all_ref, wd_ref, bd_ref, out_ref):
    """x_ref: (TB, T*C_in) batch tile; weights stay resident across the grid."""
    # Conv1d + AdaptiveAvgPool1d(1) for every branch, fused into one matmul
    # (taps + 1/L pooling were folded into w_all on the host -> K = T*C_in).
    enc = jnp.dot(x_ref[...], w_all_ref[...],
                  preferred_element_type=jnp.float32)
    enc = jnp.maximum(enc + b_all_ref[...], 0.0)             # + bias, ReLU
    # TODO(synk): nn.Dropout(0.5) omitted — eval/inference semantics (identity).
    out = jnp.dot(enc, wd_ref[...],
                  preferred_element_type=jnp.float32) + bd_ref[...]
    out_ref[...] = out.astype(out_ref.dtype)


def _fold_conv_pool_weights(params, kernel_sizes, seq_len):
    """Fold Conv1d taps + AdaptiveAvgPool1d(1) (mean over the L valid positions)
    into a single (T*C_in, sum_c) matrix.  Exact:
        pooled[b, o] = sum_{t, ci} x[b, t, ci] * W_eff[t, ci, o] + bias[o]."""
    w_parts, b_parts = [], []
    for i, k in enumerate(kernel_sizes):
        w = params[f"conv{i}_w"]                           # (c_out, C_in, k)
        L = seq_len - k + 1
        t_idx = jnp.arange(seq_len)[:, None]
        j_idx = jnp.arange(k)[None, :]
        s = t_idx - j_idx                                  # conv output position
        mask = ((s >= 0) & (s <= L - 1)).astype(w.dtype)   # (T, k) tap validity
        w_eff = jnp.einsum("tk,oik->tio", mask, w) / L     # (T, C_in, c_out)
        w_parts.append(w_eff.reshape(seq_len * w.shape[1], w.shape[0]))
        b_parts.append(params[f"conv{i}_b"])
    return (jnp.concatenate(w_parts, axis=1),              # (T*C_in, sum_c)
            jnp.concatenate(b_parts, axis=0)[None, :])     # (1, sum_c)


def textcnn_forward(token_ids, params, kernel_sizes, num_channels, block_b=256):
    # --- host glue: embedding gathers + concat, weight folding / re-layout ---
    # TODO(synk): for large vocab/embed, fuse the gather into the kernel via
    # PrefetchScalarGridSpec token-id prefetch + DMA from HBM-resident tables.
    emb = jnp.take(params["embedding"], token_ids, axis=0)
    emb_c = jnp.take(params["constant_embedding"], token_ids, axis=0)
    x = jnp.concatenate([emb, emb_c], axis=-1)             # (B, T, 2E)
    B, T, C_in = x.shape
    x_flat = x.reshape(B, T * C_in)                        # lane-dense operand

    w_all, b_all = _fold_conv_pool_weights(params, kernel_sizes, T)
    wd = params["decoder_w"].T                             # (sum_c, 2)
    bd = params["decoder_b"].reshape(1, -1)                # (1, 2)
    K = T * C_in
    sum_c = w_all.shape[1]
    n_out = wd.shape[1]

    # Batch tiling: multiple of 8 sublanes, VMEM-bounded, pipelined grid.
    TB = min(block_b, _round_up(B, 8))
    Bp = _round_up(B, TB)
    if Bp != B:
        x_flat = jnp.pad(x_flat, ((0, Bp - B), (0, 0)))
    grid = (Bp // TB,)

    # VMEM budget: double-buffered x/out tiles + resident weights, headroom,
    # clamped to a value safe on v5e/v6e (128 MiB) and v7x (64 MiB physical).
    itemsize = jnp.dtype(x_flat.dtype).itemsize
    vmem_need = (2 * TB * K + 2 * TB * n_out
                 + 2 * (K * sum_c + sum_c + sum_c * n_out + n_out)) * itemsize
    vmem_limit = int(min(max(2 * vmem_need, 8 * 1024 * 1024), 32 * 1024 * 1024))

    cost = pl.CostEstimate(
        flops=2 * Bp * K * sum_c + 2 * Bp * sum_c * n_out,
        transcendentals=0,
        bytes_accessed=(Bp * K + K * sum_c + Bp * n_out) * itemsize)

    out = pl.pallas_call(
        textcnn_kernel,
        out_shape=jax.ShapeDtypeStruct((Bp, n_out), jnp.float32),
        grid=grid,
        in_specs=[
            pl.BlockSpec((TB, K), lambda i: (i, 0)),        # x tile (pipelined)
            pl.BlockSpec((K, sum_c), lambda i: (0, 0)),     # fused conv+pool W
            pl.BlockSpec((1, sum_c), lambda i: (0, 0)),     # fused conv bias
            pl.BlockSpec((sum_c, n_out), lambda i: (0, 0)), # decoder W
            pl.BlockSpec((1, n_out), lambda i: (0, 0)),     # decoder bias
        ],
        out_specs=pl.BlockSpec((TB, n_out), lambda i: (i, 0)),
        compiler_params=pltpu.CompilerParams(
            dimension_semantics=("parallel",),
            vmem_limit_bytes=vmem_limit),
        cost_estimate=cost,
    )(x_flat, w_all, b_all, wd, bd)
    return out[:B]


def textcnn_reference(token_ids, params, kernel_sizes, num_channels):
    """Plain-JAX replica of the PyTorch forward (eval mode) for validation."""
    emb = jnp.take(params["embedding"], token_ids, axis=0)
    emb_c = jnp.take(params["constant_embedding"], token_ids, axis=0)
    x = jnp.concatenate([emb, emb_c], axis=-1)              # (B, T, 2E)
    xc = jnp.transpose(x, (0, 2, 1))                        # (B, 2E, T)  NCL
    parts = []
    for i, _ in enumerate(kernel_sizes):
        w = params[f"conv{i}_w"]                            # (c, 2E, k)
        b = params[f"conv{i}_b"]
        out = jax.lax.conv_general_dilated(
            xc, w, window_strides=(1,), padding="VALID",
            dimension_numbers=("NCH", "OIH", "NCH"))
        out = out + b[None, :, None]
        pooled = jnp.mean(out, axis=-1)                     # AdaptiveAvgPool1d(1)
        parts.append(jax.nn.relu(pooled))
    enc = jnp.concatenate(parts, axis=1)
    return enc @ params["decoder_w"].T + params["decoder_b"]


def init_params(key, vocab_size, embed_size, kernel_sizes, num_channels):
    keys = jax.random.split(key, 4 + 2 * len(kernel_sizes))
    params = {
        "embedding": jax.random.normal(keys[0], (vocab_size, embed_size),
                                       jnp.float32) * 0.1,
        "constant_embedding": jax.random.normal(keys[1], (vocab_size, embed_size),
                                                jnp.float32) * 0.1,
        "decoder_w": jax.random.normal(keys[2], (2, sum(num_channels)),
                                       jnp.float32) * 0.1,
        "decoder_b": jax.random.normal(keys[3], (2,), jnp.float32) * 0.1,
    }
    for i, (c, k) in enumerate(zip(num_channels, kernel_sizes)):
        params[f"conv{i}_w"] = jax.random.normal(
            keys[4 + 2 * i], (c, 2 * embed_size, k), jnp.float32) * 0.1
        params[f"conv{i}_b"] = jax.random.normal(
            keys[5 + 2 * i], (c,), jnp.float32) * 0.1
    return params


if __name__ == "__main__":
    vocab_size = 50
    embed_size = 16
    kernel_sizes = (3, 4, 5)
    num_channels = (8, 8, 8)
    batch, seq_len = 2, 16

    key = jax.random.PRNGKey(0)
    pkey, tkey = jax.random.split(key)
    params = init_params(pkey, vocab_size, embed_size, kernel_sizes, num_channels)
    token_ids = jax.random.randint(tkey, (batch, seq_len), 0, vocab_size,
                                   dtype=jnp.int32)

    out = textcnn_forward(token_ids, params, kernel_sizes, num_channels)
    out = jax.block_until_ready(out)

    ref = textcnn_reference(token_ids, params, kernel_sizes, num_channels)
    assert out.shape == (batch, 2)
    assert jnp.allclose(out, ref, rtol=1e-4, atol=1e-4), (out, ref)

    print("KERNEL_OK")
</pallas_src>

<mosaic_0001>
module attributes {stable_mosaic.version = 11 : i64} {
  func.func @textcnn_kernel(%arg0: i32, %arg1: memref<8x512xf32, #tpu.memory_space<vmem>>, %arg2: memref<512x24xf32, #tpu.memory_space<vmem>>, %arg3: memref<1x24xf32, #tpu.memory_space<vmem>>, %arg4: memref<24x2xf32, #tpu.memory_space<vmem>>, %arg5: memref<1x2xf32, #tpu.memory_space<vmem>>, %arg6: memref<8x2xf32, #tpu.memory_space<vmem>>) attributes {dimension_semantics = [#tpu.dimension_semantics<parallel>], iteration_bounds = array<i64: 1>, scalar_prefetch = 0 : i64, scratch_operands = 0 : i64, tpu.core_type = #tpu.core_type<tc>, window_params = [{transform_indices = @transform_0, window_bounds = array<i64: 8, 512>}, {pipeline_mode = #tpu.pipeline_mode<synchronous>, transform_indices = @transform_1, window_bounds = array<i64: 512, 24>}, {pipeline_mode = #tpu.pipeline_mode<synchronous>, transform_indices = @transform_2, window_bounds = array<i64: 1, 24>}, {pipeline_mode = #tpu.pipeline_mode<synchronous>, transform_indices = @transform_3, window_bounds = array<i64: 24, 2>}, {pipeline_mode = #tpu.pipeline_mode<synchronous>, transform_indices = @transform_4, window_bounds = array<i64: 1, 2>}, {transform_indices = @transform_5, window_bounds = array<i64: 8, 2>}]} {
    %c0 = arith.constant 0 : index
    %c0_0 = arith.constant 0 : index
    %0 = vector.load %arg1[%c0, %c0_0] : memref<8x512xf32, #tpu.memory_space<vmem>>, vector<8x512xf32>
    %c0_1 = arith.constant 0 : index
    %c0_2 = arith.constant 0 : index
    %1 = vector.load %arg2[%c0_1, %c0_2] : memref<512x24xf32, #tpu.memory_space<vmem>>, vector<512x24xf32>
    %cst = arith.constant dense<0.000000e+00> : vector<8x24xf32>
    %2 = tpu.matmul %0, %1, %cst {dimension_numbers = #tpu.dot_dimension_numbers<[1], [0], [0], [1], [0, 0, 1, 1], [], []>} : vector<8x512xf32>, vector<512x24xf32>, vector<8x24xf32> -> vector<8x24xf32>
    %c0_3 = arith.constant 0 : index
    %c0_4 = arith.constant 0 : index
    %3 = vector.load %arg3[%c0_3, %c0_4] : memref<1x24xf32, #tpu.memory_space<vmem>>, vector<1x24xf32>
    %4 = vector.broadcast %3 : vector<1x24xf32> to vector<8x24xf32>
    %5 = arith.addf %2, %4 : vector<8x24xf32>
    %cst_5 = arith.constant 0.000000e+00 : f32
    %6 = vector.broadcast %cst_5 : f32 to vector<8x24xf32>
    %7 = arith.maximumf %5, %6 : vector<8x24xf32>
    %c0_6 = arith.constant 0 : index
    %c0_7 = arith.constant 0 : index
    %8 = vector.load %arg4[%c0_6, %c0_7] : memref<24x2xf32, #tpu.memory_space<vmem>>, vector<24x2xf32>
    %cst_8 = arith.constant dense<0.000000e+00> : vector<8x2xf32>
    %9 = tpu.matmul %7, %8, %cst_8 {dimension_numbers = #tpu.dot_dimension_numbers<[1], [0], [0], [1], [0, 0, 1, 1], [], []>} : vector<8x24xf32>, vector<24x2xf32>, vector<8x2xf32> -> vector<8x2xf32>
    %c0_9 = arith.constant 0 : index
    %c0_10 = arith.constant 0 : index
    %10 = vector.load %arg5[%c0_9, %c0_10] : memref<1x2xf32, #tpu.memory_space<vmem>>, vector<1x2xf32>
    %11 = vector.broadcast %10 : vector<1x2xf32> to vector<8x2xf32>
    %12 = arith.addf %9, %11 : vector<8x2xf32>
    %c0_11 = arith.constant 0 : index
    %c0_12 = arith.constant 0 : index
    %13 = vector.load %arg6[%c0_11, %c0_12] : memref<8x2xf32, #tpu.memory_space<vmem>>, vector<8x2xf32>
    tpu.vector_store %arg6[%c0_11, %c0_12], %12 {strides = array<i32>} : memref<8x2xf32, #tpu.memory_space<vmem>>, vector<8x2xf32>,
    return
  }
  func.func @transform_0(%arg0: i32) -> (i32, i32) {
    %c0_i32 = arith.constant 0 : i32
    %c0_i32_0 = arith.constant 0 : i32
    return %arg0, %c0_i32 : i32, i32
  }
  func.func @transform_1(%arg0: i32) -> (i32, i32) {
    %c0_i32 = arith.constant 0 : i32
    %c0_i32_0 = arith.constant 0 : i32
    %c0_i32_1 = arith.constant 0 : i32
    return %c0_i32, %c0_i32_0 : i32, i32
  }
  func.func @transform_2(%arg0: i32) -> (i32, i32) {
    %c0_i32 = arith.constant 0 : i32
    %c0_i32_0 = arith.constant 0 : i32
    %c0_i32_1 = arith.constant 0 : i32
    return %c0_i32, %c0_i32_0 : i32, i32
  }
  func.func @transform_3(%arg0: i32) -> (i32, i32) {
    %c0_i32 = arith.constant 0 : i32
    %c0_i32_0 = arith.constant 0 : i32
    %c0_i32_1 = arith.constant 0 : i32
    return %c0_i32, %c0_i32_0 : i32, i32
  }
  func.func @transform_4(%arg0: i32) -> (i32, i32) {
    %c0_i32 = arith.constant 0 : i32
    %c0_i32_0 = arith.constant 0 : i32
    %c0_i32_1 = arith.constant 0 : i32
    return %c0_i32, %c0_i32_0 : i32, i32
  }
  func.func @transform_5(%arg0: i32) -> (i32, i32) {
    %c0_i32 = arith.constant 0 : i32
    %c0_i32_0 = arith.constant 0 : i32
    return %arg0, %c0_i32 : i32, i32
  }
}

</mosaic_0001>

<bundles_post_ra>
// kernel: tpu_custom_call.1
= control target key start
LH: loop header
LB: loop body
LE: loop exit
PB: predicated region body
PF: predicated region fallthrough
CT: control target
= control target key end

     0   :  { %vm484_vm0 = vmmov 0   ;;  %vm246_vm1 = vcmask 195584   ;;  %vm320_vm2 = vcmask 15360   ;;  %s737_s1 = inlined_call_operand.vmem [shape: f32[512,24], index: 1, kind: input, shape index: {}]   ;;  %s738_s0 = inlined_call_operand.vmem [shape: f32[8,512], index: 0, kind: input, shape index: {}]   ;;  %s739_s3 = inlined_call_operand.vmem [shape: f32[24,2], index: 3, kind: input, shape index: {}]   ;;  %s740_s2 = inlined_call_operand.vmem [shape: f32[1,24], index: 2, kind: input, shape index: {}]   ;;  %s741_s4 = inlined_call_operand.vmem [shape: f32[1,2], index: 4, kind: input, shape index: {}]   ;;  %s742_s5 = inlined_call_operand.vmem [shape: f32[8,2], index: 5, kind: output, shape index: {}]  }
   0x1   :  { %v40_v0 = vld [vmem:[%s737_s1 + $0x80] sm:$0xff]  ;;  %v41_v1 = vld [vmem:[%s737_s1 + $0x88] sm:$0xff]  ;;  %v42_v11 = vld [vmem:[%s737_s1 + $0x90] sm:$0xff] }
   0x2   :  { %v24_v2 = vld [vmem:[%s737_s1] sm:$0xff]  ;;  %v412_v3 = vpack.c.bf16 %v41_v1, %v40_v0  ;;  %v25_v4 = vld [vmem:[%s737_s1 + $0x8] sm:$0xff]  ;;  %v43_v13 = vld [vmem:[%s737_s1 + $0x98] sm:$0xff] }
   0x3   :  { %v72_v5 = vld [vmem:[%s737_s1 + $0x180] sm:$0xff]  ;;  %v73_v6 = vld [vmem:[%s737_s1 + $0x188] sm:$0xff]  ;;  %v414_v7 = vpack.c.bf16 %v25_v4, %v24_v2  ;;  %v26_v14 = vld [vmem:[%s737_s1 + $0x10] sm:$0xff]  ;;  %v416_v16 = vpack.c.bf16 %v43_v13, %v42_v11 }
   0x4   :  { %v444_v8 = vpack.c.bf16 %v73_v6, %v72_v5  ;;  %v56_v9 = vld [vmem:[%s737_s1 + $0x100] sm:$0xff]  ;;  %v57_v10 = vld [vmem:[%s737_s1 + $0x108] sm:$0xff]  ;;  %413 = vmatprep.subr.bf16.mxu0 %v412_v3  ;;  %v27_v15 = vld [vmem:[%s737_s1 + $0x18] sm:$0xff] }
   0x5   :  { %v446_v12 = vpack.c.bf16 %v57_v10, %v56_v9  ;;  %415 = vmatpush3.bf16.msra.mxu0 %v414_v7  ;;  %v418_v17 = vpack.c.bf16 %v27_v15, %v26_v14  ;;  %v74_v18 = vld [vmem:[%s737_s1 + $0x190] sm:$0xff]  ;;  %v75_v19 = vld [vmem:[%s737_s1 + $0x198] sm:$0xff]  ;;  %v44_v23 = vld [vmem:[%s737_s1 + $0xa0] sm:$0xff] }
   0x6   :  { %445 = vmatprep.subr.bf16.mxu1 %v444_v8  ;;  %v58_v20 = vld [vmem:[%s737_s1 + $0x110] sm:$0xff]  ;;  %v448_v21 = vpack.c.bf16 %v75_v19, %v74_v18  ;;  %v59_v22 = vld [vmem:[%s737_s1 + $0x118] sm:$0xff]  ;;  %v45_v24 = vld [vmem:[%s737_s1 + $0xa8] sm:$0xff]  ;;  %417 = vmatprep.subr.bf16.mxu0 %v416_v16 }
   0x7   :  { %447 = vmatpush3.bf16.msra.mxu1 %v446_v12  ;;  %v450_v25 = vpack.c.bf16 %v59_v22, %v58_v20  ;;  %v420_v26 = vpack.c.bf16 %v45_v24, %v44_v23  ;;  %v28_v27 = vld [vmem:[%s737_s1 + $0x20] sm:$0xff]  ;;  %v29_v28 = vld [vmem:[%s737_s1 + $0x28] sm:$0xff]  ;;  %v46_v35 = vld [vmem:[%s737_s1 + $0xb0] sm:$0xff] }
   0x8   :  { %v76_v29 = vld [vmem:[%s737_s1 + $0x1a0] sm:$0xff]  ;;  %449 = vmatprep.subr.bf16.mxu1 %v448_v21  ;;  %v77_v30 = vld [vmem:[%s737_s1 + $0x1a8] sm:$0xff]  ;;  %v422_v33 = vpack.c.bf16 %v29_v28, %v28_v27  ;;  %v47_v36 = vld [vmem:[%s737_s1 + $0xb8] sm:$0xff] }
   0x9   :  { %v60_v31 = vld [vmem:[%s737_s1 + $0x120] sm:$0xff]  ;;  %v61_v32 = vld [vmem:[%s737_s1 + $0x128] sm:$0xff]  ;;  %419 = vmatpush3.bf16.msra.mxu0 %v418_v17  ;;  %v452_v34 = vpack.c.bf16 %v77_v30, %v76_v29  ;;  %v30_v37 = vld [vmem:[%s737_s1 + $0x30] sm:$0xff]  ;;  %v424_v39 = vpack.c.bf16 %v47_v36, %v46_v35 }
   0xa   :  { %421 = vmatprep.subr.bf16.mxu0 %v420_v26  ;;  %v454_v38 = vpack.c.bf16 %v61_v32, %v60_v31  ;;  %v31_v40 = vld [vmem:[%s737_s1 + $0x38] sm:$0xff]  ;;  %v78_v41 = vld [vmem:[%s737_s1 + $0x1b0] sm:$0xff]  ;;  %v48_v46 = vld [vmem:[%s737_s1 + $0xc0] sm:$0xff] }
   0xb   :  { %451 = vmatpush3.bf16.msra.mxu1 %v450_v25  ;;  %v79_v42 = vld [vmem:[%s737_s1 + $0x1b8] sm:$0xff]  ;;  %v62_v44 = vld [vmem:[%s737_s1 + $0x130] sm:$0xff]  ;;  %v49_v47 = vld [vmem:[%s737_s1 + $0xc8] sm:$0xff]  ;;  %v426_v48 = vpack.c.bf16 %v31_v40, %v30_v37  ;;  %v483_v40 = vmov 0.0  }
   0xc   :  { %453 = vmatprep.subr.bf16.mxu1 %v452_v34  ;;  %v456_v43 = vpack.c.bf16 %v79_v42, %v78_v41  ;;  %v63_v45 = vld [vmem:[%s737_s1 + $0x138] sm:$0xff]  ;;  %v80_v49 = vld [vmem:[%s737_s1 + $0x1c0] sm:$0xff]  ;;  %v81_v50 = vld [vmem:[%s737_s1 + $0x1c8] sm:$0xff]  ;;  %v428_v52 = vpack.c.bf16 %v49_v47, %v48_v46 }
   0xd   :  { %423 = vmatpush3.bf16.msra.mxu0 %v422_v33  ;;  %v458_v51 = vpack.c.bf16 %v63_v45, %v62_v44  ;;  %v32_v53 = vld [vmem:[%s737_s1 + $0x40] sm:$0xff]  ;;  %v33_v54 = vld [vmem:[%s737_s1 + $0x48] sm:$0xff]  ;;  %v460_v56 = vpack.c.bf16 %v81_v50, %v80_v49  ;;  %v50_v58 = vld [vmem:[%s737_s1 + $0xd0] sm:$0xff] }
   0xe   :  { %425 = vmatprep.subr.bf16.mxu0 %v424_v39  ;;  %v64_v55 = vld [vmem:[%s737_s1 + $0x140] sm:$0xff]  ;;  %v65_v57 = vld [vmem:[%s737_s1 + $0x148] sm:$0xff]  ;;  %v51_v59 = vld [vmem:[%s737_s1 + $0xd8] sm:$0xff]  ;;  %v430_v62 = vpack.c.bf16 %v33_v54, %v32_v53  ;;  %v482_v39 = vmov 0.0|0.0  }
   0xf   :  { %455 = vmatpush3.bf16.msra.mxu1 %v454_v38  ;;  %v82_v60 = vld [vmem:[%s737_s1 + $0x1d0] sm:$0xff]  ;;  %v83_v61 = vld [vmem:[%s737_s1 + $0x1d8] sm:$0xff]  ;;  %v462_v63 = vpack.c.bf16 %v65_v57, %v64_v55  ;;  %v432_v0 = vpack.c.bf16 %v51_v59, %v50_v58  ;;  %v52_v6 = vld [vmem:[%s737_s1 + $0xe0] sm:$0xff] }
  0x10   :  { %457 = vmatprep.subr.bf16.mxu1 %v456_v43  ;;  %v34_v1 = vld [vmem:[%s737_s1 + $0x50] sm:$0xff]  ;;  %v35_v2 = vld [vmem:[%s737_s1 + $0x58] sm:$0xff]  ;;  %v464_v4 = vpack.c.bf16 %v83_v61, %v82_v60  ;;  %v53_v7 = vld [vmem:[%s737_s1 + $0xe8] sm:$0xff] }
  0x11   :  { %427 = vmatpush3.bf16.msra.mxu0 %v426_v48  ;;  %v66_v3 = vld [vmem:[%s737_s1 + $0x150] sm:$0xff]  ;;  %v67_v5 = vld [vmem:[%s737_s1 + $0x158] sm:$0xff]  ;;  %v84_v8 = vld [vmem:[%s737_s1 + $0x1e0] sm:$0xff]  ;;  %v434_v10 = vpack.c.bf16 %v35_v2, %v34_v1  ;;  %v436_v14 = vpack.c.bf16 %v53_v7, %v52_v6 }
  0x12   :  { %429 = vmatprep.subr.bf16.mxu0 %v428_v52  ;;  %v85_v9 = vld [vmem:[%s737_s1 + $0x1e8] sm:$0xff]  ;;  %v36_v11 = vld [vmem:[%s737_s1 + $0x60] sm:$0xff]  ;;  %v466_v13 = vpack.c.bf16 %v67_v5, %v66_v3  ;;  %v54_v19 = vld [vmem:[%s737_s1 + $0xf0] sm:$0xff] }
  0x13   :  { %459 = vmatpush3.bf16.msra.mxu1 %v458_v51  ;;  %v37_v12 = vld [vmem:[%s737_s1 + $0x68] sm:$0xff]  ;;  %v68_v15 = vld [vmem:[%s737_s1 + $0x160] sm:$0xff]  ;;  %v468_v18 = vpack.c.bf16 %v85_v9, %v84_v8  ;;  %v55_v20 = vld [vmem:[%s737_s1 + $0xf8] sm:$0xff] }
  0x14   :  { %461 = vmatprep.subr.bf16.mxu1 %v460_v56  ;;  %v69_v16 = vld [vmem:[%s737_s1 + $0x168] sm:$0xff]  ;;  %v23_v21 = vld [vmem:[%s738_s0 + $0x18] sm:$0xff]  ;;  %v86_v22 = vld [vmem:[%s737_s1 + $0x1f0] sm:$0xff]  ;;  %v438_v24 = vpack.c.bf16 %v37_v12, %v36_v11  ;;  %v440_v26 = vpack.c.bf16 %v55_v20, %v54_v19 }
  0x15   :  { %431 = vmatpush3.bf16.msra.mxu0 %v430_v62  ;;  %v21_v17 = vld [vmem:[%s738_s0 + $0x8] sm:$0xff]  ;;  %v87_v23 = vld [vmem:[%s737_s1 + $0x1f8] sm:$0xff]  ;;  %229 = vmatprep.mubr.f32.mxu1 %v23_v21  ;;  %v470_v25 = vpack.c.bf16 %v69_v16, %v68_v15  ;;  %v38_v27 = vld [vmem:[%s737_s1 + $0x70] sm:$0xff] }
  0x16   :  { %433 = vmatprep.subr.bf16.mxu0 %v432_v0  ;;  %159 = vmatprep.mubr.f32.mxu0 %v21_v17  ;;  %v39_v28 = vld [vmem:[%s737_s1 + $0x78] sm:$0xff]  ;;  %v472_v29 = vpack.c.bf16 %v87_v23, %v86_v22  ;;  %v70_v30 = vld [vmem:[%s737_s1 + $0x170] sm:$0xff]  ;;  %v20_v34 = vld [vmem:[%s738_s0] sm:$0xff] }
  0x17   :  { %463 = vmatpush3.bf16.msra.mxu1 %v462_v63  ;;  %v71_v31 = vld [vmem:[%s737_s1 + $0x178] sm:$0xff]  ;;  %v442_v32 = vpack.c.bf16 %v39_v28, %v38_v27  ;;  %v22_v35 = vld [vmem:[%s738_s0 + $0x10] sm:$0xff]  ;;  %v236_v36 = vld [vmem:[%s739_s3] sm:$0xff] }
  0x18   :  { %465 = vmatprep.subr.bf16.mxu1 %v464_v4  ;;  %v474_v33 = vpack.c.bf16 %v71_v31, %v70_v30  ;;  %v237_v37 = vld [vmem:[%s739_s3 + $0x8] sm:$0xff]  ;;  %v238_v41 = vld [vmem:[%s739_s3 + $0x10] sm:$0xff]  ;;  %v326_v43 = vld [vmem:[%s740_s2] ss:$0 sm:$0xff] }
  0x19   :  { %435 = vmatpush3.bf16.msra.mxu0 %v434_v10  ;;  %v477_v38 = vpack.c.bf16 %v237_v37, %v236_v36  ;;  %v327_v52 = vld [vmem:[%s741_s4] ss:$0 sm:$0xff] }
  0x1a   :  { %437 = vmatprep.subr.bf16.mxu0 %v436_v14 }
  0x1b   :  { %467 = vmatpush3.bf16.msra.mxu1 %v466_v13 }
  0x1c   :  { %469 = vmatprep.subr.bf16.mxu1 %v468_v18 }
  0x1d   :  { %439 = vmatpush3.bf16.msra.mxu0 %v438_v24 }
  0x1e   :  { %441 = vmatprep.subr.bf16.mxu0 %v440_v26 }
  0x1f   :  { %471 = vmatpush3.bf16.msra.mxu1 %v470_v25 }
  0x20   :  { %473 = vmatprep.subr.bf16.mxu1 %v472_v29 }
  0x21   :  { %443 = vmatpush3.bf16.msra.mxu0 %v442_v32 }
  0x22   :  { %476 = vmatprep.subr.bf16.mxu0 %v482_v39 }
  0x23   :  { %475 = vmatpush3.bf16.msra.mxu1 %v474_v33 }
  0x24   :  { %160 = vmatmul.mubr.f32.vlgmr.msra.gmra.mrb[0].mxu0 %v20_v34 }
  0x25   :  { %478 = vmatpush3.bf16.msra.mxu0 %v477_v38  ;;  %409 = vmatprep.mubr.msk.f32.mxu0 %vm484_vm0, %v483_v40 }
  0x26   :  { %230 = vmatmul.mubr.f32.vlgmr.msra.gmra.mrb[0].mxu1 %v22_v35  ;;  %407 = vmatprep.subr.mxu0 %v483_v40 }
  0x29   :  { %408 = vmatpush3.msra.mxu0 %v238_v41 }
  0xf7   :  { %v361_v42 = vpop.f32.mrb[0].mxu0 }
  0xf8   :  { %v362_v44 = vpop.f32.mrb[1].mxu0 }
  0xf9   :  { %v396_v45 = vpop.f32.mrb[0].mxu1  ;;  %v363_v46 = vadd.f32 %v362_v44, %v361_v42 }
  0xfa   :  { %v397_v47 = vpop.f32.mrb[1].mxu1 }
  0xfb   :  { %v398_v48 = vadd.f32 %v397_v47, %v396_v45  ;;  %v162_v49 = vadd.f32 %v363_v46, %v326_v43 }
  0xfd   :  { %v232_v50 = vadd.f32 %v398_v48, %v162_v49 }
  0xff   :  { %v235_v51 = vmax.f32 %v232_v50, 0.0 }
 0x101   :  { %410 = vmatmul.mubr.msk.f32.vlgmr.msra.gmra.mrb[2].mxu0 %vm246_vm1, %v235_v51 }
 0x1d4   :  { %v316_v53 = vpop.f32.mrb[2].mxu0 }
 0x1d5   :  { %v317_v54 = vadd.f32 %v327_v52, %v316_v53  ;;  %v411_v55 = vpop.f32.mrb[3].mxu0 }
 0x1d7   :  { %321 = vst.msk [vmem:[%s742_s5] sm:$0xff] %vm320_vm2, %v317_v54 }

</bundles_post_ra>
